<compile_context>
chip_gen: v7x
topology: tpu7x:2x2x1
jax: 0.10.0
libtpu: 0.0.40
codegen_flags: <defaults>
</compile_context>

<pallas_src>
import functools

import jax
import jax.numpy as jnp
from jax.experimental import pallas as pl
from jax.experimental.pallas import tpu as pltpu

HIDDEN = 256
MEAN_MIN, MEAN_MAX = -9.0, 9.0
LOG_STD_MIN, LOG_STD_MAX = -5.0, 2.0


def tanh_policy_kernel(
    x_ref,            # [TB, state_dim]                     f32
    w1_ref, b1_ref,   # [state_dim, 256] (cdt), [1, 256]    f32 bias
    w2_ref, b2_ref,   # [256, 256]       (cdt), [1, 256]    f32 bias
    wh_ref, bh_ref,   # fused mu|sigma head: [256, 2A] (cdt), [1, 2A] f32
    out_ref,          # [TB, 3A] f32, packed (mu | sigma | tanh(mu))
    *, act_dim,
):
    cdt = w1_ref.dtype  # matmul operand dtype (f32 or bf16); accumulate in f32

    x = x_ref[...].astype(cdt)

    # fc1 + ReLU (bias add / ReLU in f32 — v5e VPU has no bf16, free on v6e/v7x)
    h1 = jnp.dot(x, w1_ref[...], preferred_element_type=jnp.float32) + b1_ref[...]
    h1 = jnp.maximum(h1, 0.0)

    # fc2 + ReLU (dominant matmul: 256x256)
    h2 = jnp.dot(h1.astype(cdt), w2_ref[...],
                 preferred_element_type=jnp.float32) + b2_ref[...]
    h2 = jnp.maximum(h2, 0.0)

    # Fused mu/sigma head: one MXU push sequence instead of two under-filled ones.
    head = jnp.dot(h2.astype(cdt), wh_ref[...],
                   preferred_element_type=jnp.float32) + bh_ref[...]

    mu = jnp.clip(head[:, :act_dim], MEAN_MIN, MEAN_MAX)
    log_sigma = jnp.clip(head[:, act_dim:], LOG_STD_MIN, LOG_STD_MAX)
    sigma = jnp.exp(log_sigma)          # EUP
    tanh_mu = jnp.tanh(mu)              # EUP

    # Single packed store instead of three narrow masked stores.
    out_ref[...] = jnp.concatenate([mu, sigma, tanh_mu], axis=-1)


def _choose_tile_b(batch, max_tile=4096):
    """Batch-tile selection.

    * If the whole batch fits in one <=max_tile block, use a single grid step:
      for small B the kernel is launch/step-overhead bound and an extra grid
      step only doubles fixed cost with nothing to overlap.
    * Otherwise pick the largest multiple-of-8 divisor of batch that is
      <= max_tile (sublane constraint; divisor so there is no ragged edge).
    """
    if batch <= max_tile:
        return batch
    best = batch  # full-extent fallback (legal even if not a multiple of 8)
    for t in range(8, max_tile + 1, 8):
        if batch % t == 0:
            best = t
    return best


def tanh_policy_forward(state, params, *, tile_b=None, core_parallel=False):
    """Returns (mu, sigma, tanh_mode) — the parameters of the Tanh-transformed
    Normal distribution produced by TanhPolicy.forward / _get_outputs.

    Set core_parallel=True on v7x (2 TensorCores per chip) with an even-length
    grid to shard batch tiles across both cores; leave False on v5e/v6e.
    """
    B, state_dim = state.shape
    act_dim = params["wmu"].shape[1]
    packed_dim = 3 * act_dim

    if tile_b is None:
        tile_b = _choose_tile_b(B)
    assert B % tile_b == 0
    assert tile_b == B or tile_b % 8 == 0, \
        "tile_b must be a multiple of 8 (sublane constraint) or equal to B"

    grid = (B // tile_b,)

    x_spec = pl.BlockSpec((tile_b, state_dim), lambda i: (i, 0))
    out_spec = pl.BlockSpec((tile_b, packed_dim), lambda i: (i, 0))

    def full(arr):
        # Whole-array block, constant index map -> weights stay VMEM-resident
        # and are revisit-skipped after the first fetch.
        return pl.BlockSpec(arr.shape, lambda i: (0, 0))

    in_specs = [
        x_spec,
        full(params["w1"]), full(params["b1"]),
        full(params["w2"]), full(params["b2"]),
        full(params["wh"]), full(params["bh"]),
    ]

    # Advisory cost estimate so XLA schedules surrounding HLO around the call.
    weight_bytes = sum(
        int(params[k].size) * params[k].dtype.itemsize
        for k in ("w1", "b1", "w2", "b2", "wh", "bh"))
    flops = 2 * B * (state_dim * HIDDEN + HIDDEN * HIDDEN + HIDDEN * 2 * act_dim)
    bytes_accessed = (int(state.size) * state.dtype.itemsize
                      + weight_bytes
                      + B * packed_dim * 4)
    cost = pl.CostEstimate(flops=flops,
                           transcendentals=2 * B * act_dim,   # exp + tanh
                           bytes_accessed=bytes_accessed)

    semantics = (pltpu.CORE_PARALLEL if core_parallel else "parallel",)

    packed = pl.pallas_call(
        functools.partial(tanh_policy_kernel, act_dim=act_dim),
        out_shape=jax.ShapeDtypeStruct((B, packed_dim), jnp.float32),
        grid_spec=pltpu.PrefetchScalarGridSpec(
            num_scalar_prefetch=0,
            grid=grid,
            in_specs=in_specs,
            out_specs=out_spec,
        ),
        compiler_params=pltpu.CompilerParams(dimension_semantics=semantics),
        cost_estimate=cost,
    )(
        state,
        params["w1"], params["b1"],
        params["w2"], params["b2"],
        params["wh"], params["bh"],
    )

    # Split the packed output back into three arrays in the wrapper
    # (layout plumbing, not kernel work).
    mu = packed[:, :act_dim]
    sigma = packed[:, act_dim:2 * act_dim]
    tanh_mode = packed[:, 2 * act_dim:]
    return mu, sigma, tanh_mode


def init_params(key, state_dim, action_dim, param_dtype=jnp.bfloat16):
    """nn.Linear-style init: U(-1/sqrt(fan_in), 1/sqrt(fan_in)). Weights stored
    [in, out] (transposed vs torch's [out, in]) and cast to `param_dtype`.

    bfloat16 weights are recommended on ALL generations (v5e/v6e/v7x MXUs are
    bf16-native -> ~2x matmul rate, half the weight bytes).  Biases stay
    float32 so all elementwise work (bias add / ReLU / clip / exp / tanh) is
    f32.  Note: with bf16 weights the input state is also cast to bf16 before
    fc1 inside the kernel, which introduces input-quantization error relative
    to the original f32 PyTorch model (the pure-JAX reference below does the
    same cast, so kernel-vs-reference stays tight)."""
    def linear(k, fan_in, fan_out):
        kw, kb = jax.random.split(k)
        bound = 1.0 / jnp.sqrt(fan_in)
        w = jax.random.uniform(kw, (fan_in, fan_out), jnp.float32, -bound, bound)
        b = jax.random.uniform(kb, (1, fan_out), jnp.float32, -bound, bound)
        return w.astype(param_dtype), b

    k1, k2, k3, k4 = jax.random.split(key, 4)
    w1, b1 = linear(k1, state_dim, HIDDEN)
    w2, b2 = linear(k2, HIDDEN, HIDDEN)
    wmu, bmu = linear(k3, HIDDEN, action_dim)
    wsig, bsig = linear(k4, HIDDEN, action_dim)
    # Fuse the two heads once here (not per call): [256, 2A] / [1, 2A].
    wh = jnp.concatenate([wmu, wsig], axis=1)
    bh = jnp.concatenate([bmu, bsig], axis=1)
    return dict(w1=w1, b1=b1, w2=w2, b2=b2,
                wmu=wmu, bmu=bmu, wsig=wsig, bsig=bsig,
                wh=wh, bh=bh)


def reference_forward(state, params):
    """Pure-JAX reference of TanhPolicy._get_outputs numerics (unfused heads,
    same operand dtype / f32 accumulation as the kernel)."""
    wdt = params["w1"].dtype
    h1 = jnp.maximum(
        jnp.dot(state.astype(wdt), params["w1"],
                preferred_element_type=jnp.float32) + params["b1"], 0.0)
    h2 = jnp.maximum(
        jnp.dot(h1.astype(wdt), params["w2"],
                preferred_element_type=jnp.float32) + params["b2"], 0.0)
    mu = jnp.clip(
        jnp.dot(h2.astype(wdt), params["wmu"],
                preferred_element_type=jnp.float32) + params["bmu"],
        MEAN_MIN, MEAN_MAX)
    log_sigma = jnp.clip(
        jnp.dot(h2.astype(wdt), params["wsig"],
                preferred_element_type=jnp.float32) + params["bsig"],
        LOG_STD_MIN, LOG_STD_MAX)
    return mu, jnp.exp(log_sigma), jnp.tanh(mu)


if __name__ == "__main__":
    key = jax.random.PRNGKey(0)
    k_params, k_state = jax.random.split(key)

    batch = 16
    state_dim = 16
    action_dim = 8

    state = jax.random.normal(k_state, (batch, state_dim), dtype=jnp.float32)

    # --- f32-weight path, default tiling (single full-batch block, grid=1) ---
    params_f32 = init_params(k_params, state_dim, action_dim,
                             param_dtype=jnp.float32)
    mu, sigma, tanh_mode = tanh_policy_forward(state, params_f32)
    jax.block_until_ready((mu, sigma, tanh_mode))

    mu_r, sigma_r, tanh_r = reference_forward(state, params_f32)
    assert jnp.allclose(mu, mu_r, atol=1e-5, rtol=1e-5)
    assert jnp.allclose(sigma, sigma_r, atol=1e-5, rtol=1e-5)
    assert jnp.allclose(tanh_mode, tanh_r, atol=1e-5, rtol=1e-5)

    # --- bf16-weight path (recommended default), explicit tile_b=8 to also
    #     exercise the multi-step pipelined grid path ---
    params_bf16 = init_params(k_params, state_dim, action_dim)  # bf16 default
    mu_b, sigma_b, tanh_b = tanh_policy_forward(state, params_bf16, tile_b=8)
    jax.block_until_ready((mu_b, sigma_b, tanh_b))

    mu_br, sigma_br, tanh_br = reference_forward(state, params_bf16)
    assert jnp.allclose(mu_b, mu_br, atol=1e-2, rtol=1e-2)
    assert jnp.allclose(sigma_b, sigma_br, atol=1e-2, rtol=1e-2)
    assert jnp.allclose(tanh_b, tanh_br, atol=1e-2, rtol=1e-2)

    # TODO(synk): the TransformedDistribution/TanhTransform object itself
    # (rsample / log_prob machinery) has no array-level Pallas equivalent;
    # the kernel returns its defining parameters (mu, sigma) and tanh(mu).

    print("KERNEL_OK")
</pallas_src>

<mosaic_0001>
module attributes {stable_mosaic.version = 11 : i64} {
  func.func @tanh_policy_kernel(%arg0: i32, %arg1: memref<16x16xf32, #tpu.memory_space<vmem>>, %arg2: memref<16x256xf32, #tpu.memory_space<vmem>>, %arg3: memref<1x256xf32, #tpu.memory_space<vmem>>, %arg4: memref<256x256xf32, #tpu.memory_space<vmem>>, %arg5: memref<1x256xf32, #tpu.memory_space<vmem>>, %arg6: memref<256x16xf32, #tpu.memory_space<vmem>>, %arg7: memref<1x16xf32, #tpu.memory_space<vmem>>, %arg8: memref<16x24xf32, #tpu.memory_space<vmem>>) attributes {dimension_semantics = [#tpu.dimension_semantics<parallel>], iteration_bounds = array<i64: 1>, scalar_prefetch = 0 : i64, scratch_operands = 0 : i64, tpu.core_type = #tpu.core_type<tc>, window_params = [{transform_indices = @transform_0, window_bounds = array<i64: 16, 16>}, {pipeline_mode = #tpu.pipeline_mode<synchronous>, transform_indices = @transform_1, window_bounds = array<i64: 16, 256>}, {pipeline_mode = #tpu.pipeline_mode<synchronous>, transform_indices = @transform_2, window_bounds = array<i64: 1, 256>}, {pipeline_mode = #tpu.pipeline_mode<synchronous>, transform_indices = @transform_3, window_bounds = array<i64: 256, 256>}, {pipeline_mode = #tpu.pipeline_mode<synchronous>, transform_indices = @transform_4, window_bounds = array<i64: 1, 256>}, {pipeline_mode = #tpu.pipeline_mode<synchronous>, transform_indices = @transform_5, window_bounds = array<i64: 256, 16>}, {pipeline_mode = #tpu.pipeline_mode<synchronous>, transform_indices = @transform_6, window_bounds = array<i64: 1, 16>}, {transform_indices = @transform_7, window_bounds = array<i64: 16, 24>}]} {
    %c0 = arith.constant 0 : index
    %c0_0 = arith.constant 0 : index
    %0 = vector.load %arg1[%c0, %c0_0] : memref<16x16xf32, #tpu.memory_space<vmem>>, vector<16x16xf32>
    %c0_1 = arith.constant 0 : index
    %c0_2 = arith.constant 0 : index
    %1 = vector.load %arg2[%c0_1, %c0_2] : memref<16x256xf32, #tpu.memory_space<vmem>>, vector<16x256xf32>
    %cst = arith.constant dense<0.000000e+00> : vector<16x256xf32>
    %2 = tpu.matmul %0, %1, %cst {dimension_numbers = #tpu.dot_dimension_numbers<[1], [0], [0], [1], [0, 0, 1, 1], [], []>} : vector<16x16xf32>, vector<16x256xf32>, vector<16x256xf32> -> vector<16x256xf32>
    %c0_3 = arith.constant 0 : index
    %c0_4 = arith.constant 0 : index
    %3 = vector.load %arg3[%c0_3, %c0_4] : memref<1x256xf32, #tpu.memory_space<vmem>>, vector<1x256xf32>
    %4 = vector.broadcast %3 : vector<1x256xf32> to vector<16x256xf32>
    %5 = arith.addf %2, %4 : vector<16x256xf32>
    %cst_5 = arith.constant 0.000000e+00 : f32
    %6 = vector.broadcast %cst_5 : f32 to vector<16x256xf32>
    %7 = arith.maximumf %5, %6 : vector<16x256xf32>
    %c0_6 = arith.constant 0 : index
    %c0_7 = arith.constant 0 : index
    %8 = vector.load %arg4[%c0_6, %c0_7] : memref<256x256xf32, #tpu.memory_space<vmem>>, vector<256x256xf32>
    %cst_8 = arith.constant dense<0.000000e+00> : vector<16x256xf32>
    %9 = tpu.matmul %7, %8, %cst_8 {dimension_numbers = #tpu.dot_dimension_numbers<[1], [0], [0], [1], [0, 0, 1, 1], [], []>} : vector<16x256xf32>, vector<256x256xf32>, vector<16x256xf32> -> vector<16x256xf32>
    %c0_9 = arith.constant 0 : index
    %c0_10 = arith.constant 0 : index
    %10 = vector.load %arg5[%c0_9, %c0_10] : memref<1x256xf32, #tpu.memory_space<vmem>>, vector<1x256xf32>
    %11 = vector.broadcast %10 : vector<1x256xf32> to vector<16x256xf32>
    %12 = arith.addf %9, %11 : vector<16x256xf32>
    %cst_11 = arith.constant 0.000000e+00 : f32
    %13 = vector.broadcast %cst_11 : f32 to vector<16x256xf32>
    %14 = arith.maximumf %12, %13 : vector<16x256xf32>
    %c0_12 = arith.constant 0 : index
    %c0_13 = arith.constant 0 : index
    %15 = vector.load %arg6[%c0_12, %c0_13] : memref<256x16xf32, #tpu.memory_space<vmem>>, vector<256x16xf32>
    %cst_14 = arith.constant dense<0.000000e+00> : vector<16x16xf32>
    %16 = tpu.matmul %14, %15, %cst_14 {dimension_numbers = #tpu.dot_dimension_numbers<[1], [0], [0], [1], [0, 0, 1, 1], [], []>} : vector<16x256xf32>, vector<256x16xf32>, vector<16x16xf32> -> vector<16x16xf32>
    %c0_15 = arith.constant 0 : index
    %c0_16 = arith.constant 0 : index
    %17 = vector.load %arg7[%c0_15, %c0_16] : memref<1x16xf32, #tpu.memory_space<vmem>>, vector<1x16xf32>
    %18 = vector.broadcast %17 : vector<1x16xf32> to vector<16x16xf32>
    %19 = arith.addf %16, %18 : vector<16x16xf32>
    %20 = vector.extract_strided_slice %19 {offsets = [0, 0], sizes = [16, 8], strides = [1, 1]} : vector<16x16xf32> to vector<16x8xf32>
    %cst_17 = arith.constant -9.000000e+00 : f32
    %cst_18 = arith.constant 9.000000e+00 : f32
    %21 = vector.broadcast %cst_17 : f32 to vector<16x8xf32>
    %22 = arith.maximumf %21, %20 : vector<16x8xf32>
    %23 = vector.broadcast %cst_18 : f32 to vector<16x8xf32>
    %24 = arith.minimumf %23, %22 : vector<16x8xf32>
    %25 = vector.extract_strided_slice %19 {offsets = [0, 8], sizes = [16, 8], strides = [1, 1]} : vector<16x16xf32> to vector<16x8xf32>
    %cst_19 = arith.constant -5.000000e+00 : f32
    %cst_20 = arith.constant 2.000000e+00 : f32
    %26 = vector.broadcast %cst_19 : f32 to vector<16x8xf32>
    %27 = arith.maximumf %26, %25 : vector<16x8xf32>
    %28 = vector.broadcast %cst_20 : f32 to vector<16x8xf32>
    %29 = arith.minimumf %28, %27 : vector<16x8xf32>
    %30 = math.exp %29 : vector<16x8xf32>
    %31 = math.tanh %24 : vector<16x8xf32>
    %32 = tpu.concatenate %24, %30, %31 in 1 : vector<16x8xf32>, vector<16x8xf32>, vector<16x8xf32> -> vector<16x24xf32>
    %c0_21 = arith.constant 0 : index
    %c0_22 = arith.constant 0 : index
    %33 = vector.load %arg8[%c0_21, %c0_22] : memref<16x24xf32, #tpu.memory_space<vmem>>, vector<16x24xf32>
    tpu.vector_store %arg8[%c0_21, %c0_22], %32 {strides = array<i32>} : memref<16x24xf32, #tpu.memory_space<vmem>>, vector<16x24xf32>,
    return
  }
  func.func @transform_0(%arg0: i32) -> (i32, i32) {
    %c0_i32 = arith.constant 0 : i32
    %c0_i32_0 = arith.constant 0 : i32
    return %arg0, %c0_i32 : i32, i32
  }
  func.func @transform_1(%arg0: i32) -> (i32, i32) {
    %c0_i32 = arith.constant 0 : i32
    %c0_i32_0 = arith.constant 0 : i32
    %c0_i32_1 = arith.constant 0 : i32
    return %c0_i32, %c0_i32_0 : i32, i32
  }
  func.func @transform_2(%arg0: i32) -> (i32, i32) {
    %c0_i32 = arith.constant 0 : i32
    %c0_i32_0 = arith.constant 0 : i32
    %c0_i32_1 = arith.constant 0 : i32
    return %c0_i32, %c0_i32_0 : i32, i32
  }
  func.func @transform_3(%arg0: i32) -> (i32, i32) {
    %c0_i32 = arith.constant 0 : i32
    %c0_i32_0 = arith.constant 0 : i32
    %c0_i32_1 = arith.constant 0 : i32
    return %c0_i32, %c0_i32_0 : i32, i32
  }
  func.func @transform_4(%arg0: i32) -> (i32, i32) {
    %c0_i32 = arith.constant 0 : i32
    %c0_i32_0 = arith.constant 0 : i32
    %c0_i32_1 = arith.constant 0 : i32
    return %c0_i32, %c0_i32_0 : i32, i32
  }
  func.func @transform_5(%arg0: i32) -> (i32, i32) {
    %c0_i32 = arith.constant 0 : i32
    %c0_i32_0 = arith.constant 0 : i32
    %c0_i32_1 = arith.constant 0 : i32
    return %c0_i32, %c0_i32_0 : i32, i32
  }
  func.func @transform_6(%arg0: i32) -> (i32, i32) {
    %c0_i32 = arith.constant 0 : i32
    %c0_i32_0 = arith.constant 0 : i32
    %c0_i32_1 = arith.constant 0 : i32
    return %c0_i32, %c0_i32_0 : i32, i32
  }
  func.func @transform_7(%arg0: i32) -> (i32, i32) {
    %c0_i32 = arith.constant 0 : i32
    %c0_i32_0 = arith.constant 0 : i32
    return %arg0, %c0_i32 : i32, i32
  }
}

</mosaic_0001>

<bundles_post_ra>
// kernel: tpu_custom_call.1
= control target key start
LH: loop header
LB: loop body
LE: loop exit
PB: predicated region body
PF: predicated region fallthrough
CT: control target
= control target key end

     0   :  { %12 = vsyncpa [#allocation3], 0  ;;  %s872_s0 = inlined_call_operand.vmem [shape: f32[16,16], index: 0, kind: input, shape index: {}]   ;;  %s873_s1 = inlined_call_operand.vmem [shape: f32[16,256], index: 1, kind: input, shape index: {}]   ;;  %s874_s2 = inlined_call_operand.vmem [shape: f32[1,256], index: 2, kind: input, shape index: {}]   ;;  %s875_s3 = inlined_call_operand.hbm [shape: f32[256,256], index: 3, kind: input, shape index: {}]   ;;  %s876_s4 = inlined_call_operand.vmem [shape: f32[1,256], index: 4, kind: input, shape index: {}]   ;;  %s877_s5 = inlined_call_operand.vmem [shape: f32[256,16], index: 5, kind: input, shape index: {}]   ;;  %s878_s6 = inlined_call_operand.vmem [shape: f32[1,16], index: 6, kind: input, shape index: {}]   ;;  %s879_s7 = inlined_call_operand.hbm [shape: f32[16,24], index: 7, kind: output, shape index: {}]  }
   0x1   :  { %13 = vsyncpa [#allocation4], 0  ;;  %s671_s24 = smov [#allocation2]   ;;  %s623_s28 = scalar_lea.hbm %s875_s3, 8192 }
   0x2   :  { %s25_s25 = sshll.u32 %s671_s24, 4  ;;  %p624_p0 = scmp.ne.s32.totalorder %s875_s3, %s623_s28  ;;  %s26_s25 = int_to_ptr.vmem [resolvable:$true] %s25_s25 }
   0x3   :  { %p627_p1 = scmp.lt.u32.totalorder %s623_s28, %s875_s3 }
   0x5   :  { %p629_p2 = pnand %p627_p1, %p624_p0 }
   0x7   :  { %632 = shalt.err (!%p629_p2)
}
   0x8   :  { %s633_s10 = scalar_lea.vmem %s26_s25, 8192  ;;  %p638_p4 = scmp.lt.s32.totalorder %s26_s25, %s26_s25 }
   0x9   :  { %p634_p3 = scmp.ne.s32.totalorder %s26_s25, %s633_s10  ;;  %p639_p5 = scmp.lt.s32.totalorder %s633_s10, %s633_s10 }
   0xb   :  { %p640_p6 = por %p639_p5, %p638_p4 }
   0xd   :  { %p641_p7 = pnand %p640_p6, %p634_p3 }
   0xf   :  { %644 = shalt.err (!%p641_p7)
}
  0x10   :  { %s672_s11 = smov 256   ;;  %s673_s12 = smov 16  }
  0x11   :  { %31 = dma.hbm_to_vmem [thread:$0]  %s875_s3, 8192, %s26_s25, [#allocation3], %s672_s11, %s672_s11, %s673_s12  }
  0x12   :  { %667 = dma.done.wait [#allocation3], 8192  }
  0x13   :  { %668 = vsyncadd [#allocation3], 4294959104  ;;  %v674_v0 = vmov 0.0   ;;  %v44_v1 = vld [vmem:[%s873_s1 + $0x8] sm:$0xff]  ;;  %v46_v2 = vld [vmem:[%s873_s1 + $0x18] sm:$0xff]  ;;  %vm59_vm0 = vcmask 130048  }
  0x14   :  { %130 = vmatprep.mubr.f32.mxu0 %v674_v0  ;;  %v43_v3 = vld [vmem:[%s873_s1] sm:$0xff]  ;;  %v508_v4 = vpack.c.bf16 %v46_v2, %v44_v1  ;;  %v45_v5 = vld [vmem:[%s873_s1 + $0x10] sm:$0xff]  ;;  %v148_v8 = vld [vmem:[#allocation2 + $0x8] sm:$0xff]  ;;  %vm440_vm1 = vcmask 64512   ;;  %vm445_vm2 = vcmask 195584  }
  0x15   :  { %v510_v6 = vpack.c.bf16 %v45_v5, %v43_v3  ;;  %v41_v7 = vld [vmem:[%s872_s0] sm:$0xff]  ;;  %v150_v9 = vld [vmem:[#allocation2 + $0x18] sm:$0xff]  ;;  %v149_v12 = vld [vmem:[#allocation2 + $0x10] sm:$0xff] }
  0x16   :  { %v147_v10 = vld [vmem:[#allocation2] sm:$0xff]  ;;  %509 = vmatprep.subr.bf16.mxu0 %v508_v4  ;;  %v512_v11 = vpack.c.bf16 %v150_v9, %v148_v8  ;;  %v152_v13 = vld [vmem:[#allocation2 + $0x28] sm:$0xff]  ;;  %v154_v14 = vld [vmem:[#allocation2 + $0x38] sm:$0xff] }
  0x17   :  { %511 = vmatpush1.bf16.msra.mxu0 %v510_v6  ;;  %v514_v15 = vpack.c.bf16 %v149_v12, %v147_v10  ;;  %v516_v16 = vpack.c.bf16 %v154_v14, %v152_v13  ;;  %v151_v17 = vld [vmem:[#allocation2 + $0x20] sm:$0xff]  ;;  %v153_v18 = vld [vmem:[#allocation2 + $0x30] sm:$0xff]  ;;  %v156_v19 = vld [vmem:[#allocation2 + $0x48] sm:$0xff] }
  0x18   :  { %513 = vmatprep.subr.bf16.mxu1 %v512_v11  ;;  %v158_v20 = vld [vmem:[#allocation2 + $0x58] sm:$0xff]  ;;  %v518_v21 = vpack.c.bf16 %v153_v18, %v151_v17  ;;  %v155_v23 = vld [vmem:[#allocation2 + $0x40] sm:$0xff]  ;;  %v157_v24 = vld [vmem:[#allocation2 + $0x50] sm:$0xff] }
  0x19   :  { %515 = vmatpush1.bf16.msra.mxu1 %v514_v15  ;;  %v520_v22 = vpack.c.bf16 %v158_v20, %v156_v19  ;;  %v42_v25 = vld [vmem:[%s872_s0 + $0x8] sm:$0xff]  ;;  %v162_v27 = vld [vmem:[#allocation2 + $0x78] sm:$0xff]  ;;  %v522_v28 = vpack.c.bf16 %v157_v24, %v155_v23  ;;  %v159_v30 = vld [vmem:[#allocation2 + $0x60] sm:$0xff] }
  0x1a   :  { %465 = vmatmul.mubr.msk.f32.vlgmr.msra.gmra.mrb[0].mxu0 %vm59_vm0, %v41_v7  ;;  %517 = vmatprep.subr.bf16.mxu1 %v516_v16  ;;  %v160_v26 = vld [vmem:[#allocation2 + $0x68] sm:$0xff]  ;;  %v161_v31 = vld [vmem:[#allocation2 + $0x70] sm:$0xff]  ;;  %v166_v33 = vld [vmem:[#allocation2 + $0x98] sm:$0xff] }
  0x1b   :  { %136 = vmatprep.mubr.f32.mxu0 %v674_v0  ;;  %v524_v29 = vpack.c.bf16 %v162_v27, %v160_v26  ;;  %v164_v32 = vld [vmem:[#allocation2 + $0x88] sm:$0xff]  ;;  %v526_v34 = vpack.c.bf16 %v161_v31, %v159_v30  ;;  %v163_v36 = vld [vmem:[#allocation2 + $0x80] sm:$0xff]  ;;  %v165_v37 = vld [vmem:[#allocation2 + $0x90] sm:$0xff] }
  0x1c   :  { %v528_v35 = vpack.c.bf16 %v166_v33, %v164_v32  ;;  %v168_v38 = vld [vmem:[#allocation2 + $0xa8] sm:$0xff]  ;;  %v170_v39 = vld [vmem:[#allocation2 + $0xb8] sm:$0xff]  ;;  %v530_v40 = vpack.c.bf16 %v165_v37, %v163_v36  ;;  %v167_v42 = vld [vmem:[#allocation2 + $0xa0] sm:$0xff] }
  0x1d   :  { %519 = vmatpush1.bf16.msra.mxu1 %v518_v21  ;;  %v532_v41 = vpack.c.bf16 %v170_v39, %v168_v38  ;;  %v169_v43 = vld [vmem:[#allocation2 + $0xb0] sm:$0xff]  ;;  %v172_v44 = vld [vmem:[#allocation2 + $0xc8] sm:$0xff]  ;;  %v174_v45 = vld [vmem:[#allocation2 + $0xd8] sm:$0xff] }
  0x1e   :  { %466 = vmatmul.mubr.msk.f32.gmra.mrb[2].mxu0 %vm59_vm0, %v42_v25  ;;  %521 = vmatprep.subr.bf16.mxu1 %v520_v22  ;;  %v534_v46 = vpack.c.bf16 %v169_v43, %v167_v42  ;;  %v536_v47 = vpack.c.bf16 %v174_v45, %v172_v44  ;;  %v171_v48 = vld [vmem:[#allocation2 + $0xc0] sm:$0xff]  ;;  %v173_v49 = vld [vmem:[#allocation2 + $0xd0] sm:$0xff]  ;;  %v176_v50 = vld [vmem:[#allocation2 + $0xe8] sm:$0xff] }
  0x1f   :  { %v178_v51 = vld [vmem:[#allocation2 + $0xf8] sm:$0xff]  ;;  %v538_v52 = vpack.c.bf16 %v173_v49, %v171_v48  ;;  %v175_v54 = vld [vmem:[#allocation2 + $0xe0] sm:$0xff]  ;;  %v177_v55 = vld [vmem:[#allocation2 + $0xf0] sm:$0xff] }
  0x20   :  { %v540_v53 = vpack.c.bf16 %v178_v51, %v176_v50  ;;  %v180_v56 = vld [vmem:[#allocation2 + $0x108] sm:$0xff]  ;;  %v182_v57 = vld [vmem:[#allocation2 + $0x118] sm:$0xff]  ;;  %v542_v58 = vpack.c.bf16 %v177_v55, %v175_v54  ;;  %v179_v60 = vld [vmem:[#allocation2 + $0x100] sm:$0xff] }
  0x21   :  { %523 = vmatpush1.bf16.msra.mxu1 %v522_v28  ;;  %v544_v59 = vpack.c.bf16 %v182_v57, %v180_v56  ;;  %v181_v61 = vld [vmem:[#allocation2 + $0x110] sm:$0xff]  ;;  %v184_v62 = vld [vmem:[#allocation2 + $0x128] sm:$0xff]  ;;  %v186_v63 = vld [vmem:[#allocation2 + $0x138] sm:$0xff] }
  0x22   :  { %525 = vmatprep.subr.bf16.mxu1 %v524_v29  ;;  %v546_v0 = vpack.c.bf16 %v181_v61, %v179_v60  ;;  %v548_v1 = vpack.c.bf16 %v186_v63, %v184_v62  ;;  %v183_v2 = vld [vmem:[#allocation2 + $0x120] sm:$0xff]  ;;  %v185_v3 = vld [vmem:[#allocation2 + $0x130] sm:$0xff]  ;;  %v188_v4 = vld [vmem:[#allocation2 + $0x148] sm:$0xff] }
  0x23   :  { %v190_v5 = vld [vmem:[#allocation2 + $0x158] sm:$0xff]  ;;  %v550_v6 = vpack.c.bf16 %v185_v3, %v183_v2  ;;  %v187_v8 = vld [vmem:[#allocation2 + $0x140] sm:$0xff]  ;;  %v189_v9 = vld [vmem:[#allocation2 + $0x150] sm:$0xff] }
  0x24   :  { %v552_v7 = vpack.c.bf16 %v190_v5, %v188_v4  ;;  %v192_v10 = vld [vmem:[#allocation2 + $0x168] sm:$0xff]  ;;  %v194_v11 = vld [vmem:[#allocation2 + $0x178] sm:$0xff]  ;;  %v554_v12 = vpack.c.bf16 %v189_v9, %v187_v8  ;;  %v191_v14 = vld [vmem:[#allocation2 + $0x160] sm:$0xff] }
  0x25   :  { %527 = vmatpush1.bf16.msra.mxu1 %v526_v34  ;;  %v556_v13 = vpack.c.bf16 %v194_v11, %v192_v10  ;;  %v193_v15 = vld [vmem:[#allocation2 + $0x170] sm:$0xff]  ;;  %v196_v16 = vld [vmem:[#allocation2 + $0x188] sm:$0xff]  ;;  %v198_v17 = vld [vmem:[#allocation2 + $0x198] sm:$0xff] }
  0x26   :  { %529 = vmatprep.subr.bf16.mxu1 %v528_v35  ;;  %v558_v18 = vpack.c.bf16 %v193_v15, %v191_v14  ;;  %v560_v19 = vpack.c.bf16 %v198_v17, %v196_v16  ;;  %v195_v20 = vld [vmem:[#allocation2 + $0x180] sm:$0xff]  ;;  %v197_v21 = vld [vmem:[#allocation2 + $0x190] sm:$0xff]  ;;  %v200_v22 = vld [vmem:[#allocation2 + $0x1a8] sm:$0xff]  ;;  %v49_v16 = vlaneseq }
  0x27   :  { %v202_v23 = vld [vmem:[#allocation2 + $0x1b8] sm:$0xff]  ;;  %v562_v24 = vpack.c.bf16 %v197_v21, %v195_v20  ;;  %v199_v26 = vld [vmem:[#allocation2 + $0x1a0] sm:$0xff]  ;;  %v201_v27 = vld [vmem:[#allocation2 + $0x1b0] sm:$0xff] }
  0x28   :  { %v564_v25 = vpack.c.bf16 %v202_v23, %v200_v22  ;;  %v204_v28 = vld [vmem:[#allocation2 + $0x1c8] sm:$0xff]  ;;  %v206_v29 = vld [vmem:[#allocation2 + $0x1d8] sm:$0xff]  ;;  %v566_v30 = vpack.c.bf16 %v201_v27, %v199_v26  ;;  %v203_v32 = vld [vmem:[#allocation2 + $0x1c0] sm:$0xff]  ;;  %v50_v17 = vshrl.u32 %v49_v16, 7 }
  0x29   :  { %531 = vmatpush1.bf16.msra.mxu1 %v530_v40  ;;  %v568_v31 = vpack.c.bf16 %v206_v29, %v204_v28  ;;  %v205_v33 = vld [vmem:[#allocation2 + $0x1d0] sm:$0xff]  ;;  %v208_v35 = vld [vmem:[#allocation2 + $0x1e8] sm:$0xff]  ;;  %v210_v36 = vld [vmem:[#allocation2 + $0x1f8] sm:$0xff] }
  0x2a   :  { %533 = vmatprep.subr.bf16.mxu1 %v532_v41  ;;  %v570_v34 = vpack.c.bf16 %v205_v33, %v203_v32  ;;  %v572_v37 = vpack.c.bf16 %v210_v36, %v208_v35  ;;  %v207_v38 = vld [vmem:[#allocation2 + $0x1e0] sm:$0xff]  ;;  %v209_v39 = vld [vmem:[#allocation2 + $0x1f0] sm:$0xff]  ;;  %v321_v42 = vld [vmem:[%s877_s5 + $0x88] sm:$0xff]  ;;  %v55_v20 = vsub.s32 1, %v50_v17 }
  0x2b   :  { %v574_v40 = vpack.c.bf16 %v209_v39, %v207_v38  ;;  %v320_v41 = vld [vmem:[%s877_s5 + $0x80] sm:$0xff]  ;;  %v305_v45 = vld [vmem:[%s877_s5 + $0x8] sm:$0xff]  ;;  %v306_v50 = vld [vmem:[%s877_s5 + $0x10] sm:$0xff] }
  0x2c   :  { %v304_v43 = vld [vmem:[%s877_s5] sm:$0xff]  ;;  %v576_v44 = vpack.c.bf16 %v321_v42, %v320_v41  ;;  %v307_v51 = vld [vmem:[%s877_s5 + $0x18] sm:$0xff]  ;;  %v309_v57 = vld [vmem:[%s877_s5 + $0x28] sm:$0xff] }
  0x2d   :  { %535 = vmatpush1.bf16.msra.mxu1 %v534_v46  ;;  %v322_v46 = vld [vmem:[%s877_s5 + $0x90] sm:$0xff]  ;;  %v578_v48 = vpack.c.bf16 %v305_v45, %v304_v43  ;;  %v582_v54 = vpack.c.bf16 %v307_v51, %v306_v50  ;;  %v308_v56 = vld [vmem:[%s877_s5 + $0x20] sm:$0xff]  ;;  %v311_v63 = vld [vmem:[%s877_s5 + $0x38] sm:$0xff] }
  0x2e   :  { %537 = vmatprep.subr.bf16.mxu1 %v536_v47  ;;  %v323_v47 = vld [vmem:[%s877_s5 + $0x98] sm:$0xff]  ;;  %577 = vmatprep.subr.bf16.mxu0 %v576_v44  ;;  %v586_v60 = vpack.c.bf16 %v309_v57, %v308_v56  ;;  %v310_v62 = vld [vmem:[%s877_s5 + $0x30] sm:$0xff]  ;;  %v312_v4 = vld [vmem:[%s877_s5 + $0x40] sm:$0xff] }
  0x2f   :  { %v580_v49 = vpack.c.bf16 %v323_v47, %v322_v46  ;;  %579 = vmatpush3.bf16.msra.mxu0 %v578_v48  ;;  %v590_v2 = vpack.c.bf16 %v311_v63, %v310_v62  ;;  %v313_v5 = vld [vmem:[%s877_s5 + $0x48] sm:$0xff]  ;;  %v314_v10 = vld [vmem:[%s877_s5 + $0x50] sm:$0xff]  ;;  %v315_v11 = vld [vmem:[%s877_s5 + $0x58] sm:$0xff] }
  0x30   :  { %v594_v8 = vpack.c.bf16 %v313_v5, %v312_v4  ;;  %v598_v14 = vpack.c.bf16 %v315_v11, %v314_v10  ;;  %v316_v35 = vld [vmem:[%s877_s5 + $0x60] sm:$0xff]  ;;  %v317_v36 = vld [vmem:[%s877_s5 + $0x68] sm:$0xff]  ;;  %v334_v38 = vld [vmem:[%s877_s5 + $0xf0] sm:$0xff] }
  0x31   :  { %539 = vmatpush1.bf16.msra.mxu1 %v538_v52  ;;  %v324_v52 = vld [vmem:[%s877_s5 + $0xa0] sm:$0xff]  ;;  %581 = vmatprep.subr.bf16.mxu0 %v580_v49  ;;  %v335_v39 = vld [vmem:[%s877_s5 + $0xf8] sm:$0xff]  ;;  %v318_v41 = vld [vmem:[%s877_s5 + $0x70] sm:$0xff] }
  0x32   :  { %541 = vmatprep.subr.bf16.mxu1 %v540_v53  ;;  %v325_v53 = vld [vmem:[%s877_s5 + $0xa8] sm:$0xff]  ;;  %v319_v42 = vld [vmem:[%s877_s5 + $0x78] sm:$0xff]  ;;  %v211_v44 = vld [vmem:[%s876_s4] sm:$0x3] }
  0x33   :  { %v584_v55 = vpack.c.bf16 %v325_v53, %v324_v52  ;;  %583 = vmatpush3.bf16.msra.mxu0 %v582_v54  ;;  %v606_v43 = vpack.c.bf16 %v319_v42, %v318_v41  ;;  %v220_v46 = vrot.slane %v211_v44, %v55_v20 }
  0x35   :  { %543 = vmatpush1.bf16.msra.mxu1 %v542_v58  ;;  %v326_v58 = vld [vmem:[%s877_s5 + $0xb0] sm:$0xff]  ;;  %585 = vmatprep.subr.bf16.mxu0 %v584_v55 }
  0x36   :  { %545 = vmatprep.subr.bf16.mxu1 %v544_v59  ;;  %v327_v59 = vld [vmem:[%s877_s5 + $0xb8] sm:$0xff] }
  0x37   :  { %v588_v61 = vpack.c.bf16 %v327_v59, %v326_v58  ;;  %587 = vmatpush3.bf16.msra.mxu0 %v586_v60  ;;  %v467_v60 = vld [vmem:[%s878_s6] ss:$0 sm:$0xff]  ;;  %s675_s6 = smov [#allocation5]  }
  0x38   :  { %s453_s19 = sshll.u32 %s675_s6, 4  ;;  %s454_s19 = int_to_ptr.vmem [resolvable:$true] %s453_s19 }
  0x39   :  { %547 = vmatpush1.bf16.msra.mxu1 %v546_v0  ;;  %v328_v0 = vld [vmem:[%s877_s5 + $0xc0] sm:$0xff]  ;;  %589 = vmatprep.subr.bf16.mxu0 %v588_v61  ;;  %s645_s20 = scalar_lea.vmem %s454_s19, 256  ;;  %p650_p9 = scmp.lt.s32.totalorder %s454_s19, %s454_s19 }
  0x3a   :  { %549 = vmatprep.subr.bf16.mxu1 %v548_v1  ;;  %v329_v1 = vld [vmem:[%s877_s5 + $0xc8] sm:$0xff]  ;;  %p646_p8 = scmp.ne.s32.totalorder %s454_s19, %s645_s20  ;;  %p651_p10 = scmp.lt.s32.totalorder %s645_s20, %s645_s20 }
  0x3b   :  { %v592_v3 = vpack.c.bf16 %v329_v1, %v328_v0  ;;  %591 = vmatpush3.bf16.msra.mxu0 %v590_v2 }
  0x3c   :  { %p652_p11 = por %p651_p10, %p650_p9 }
  0x3d   :  { %551 = vmatpush1.bf16.msra.mxu1 %v550_v6  ;;  %v330_v6 = vld [vmem:[%s877_s5 + $0xd0] sm:$0xff]  ;;  %593 = vmatprep.subr.bf16.mxu0 %v592_v3 }
  0x3e   :  { %553 = vmatprep.subr.bf16.mxu1 %v552_v7  ;;  %v331_v7 = vld [vmem:[%s877_s5 + $0xd8] sm:$0xff]  ;;  %p653_p12 = pnand %p652_p11, %p646_p8 }
  0x3f   :  { %v596_v9 = vpack.c.bf16 %v331_v7, %v330_v6  ;;  %595 = vmatpush3.bf16.msra.mxu0 %v594_v8 }
  0x41   :  { %555 = vmatpush1.bf16.msra.mxu1 %v554_v12  ;;  %v332_v12 = vld [vmem:[%s877_s5 + $0xe0] sm:$0xff]  ;;  %597 = vmatprep.subr.bf16.mxu0 %v596_v9 }
  0x42   :  { %557 = vmatprep.subr.bf16.mxu1 %v556_v13  ;;  %v333_v13 = vld [vmem:[%s877_s5 + $0xe8] sm:$0xff] }
  0x43   :  { %v600_v15 = vpack.c.bf16 %v333_v13, %v332_v12  ;;  %599 = vmatpush3.bf16.msra.mxu0 %v598_v14 }
  0x45   :  { %559 = vmatpush1.bf16.msra.mxu1 %v558_v18  ;;  %601 = vmatprep.subr.bf16.mxu0 %v600_v15  ;;  %v51_v18 = vsub.s32 0, %v50_v17 }
  0x46   :  { %561 = vmatprep.subr.bf16.mxu1 %v560_v19  ;;  %v47_v19 = vld [vmem:[%s874_s2] sm:$0x3] }
  0x47   :  { %v52_v21 = vrot.slane %v47_v19, %v51_v18  ;;  %v56_v22 = vrot.slane %v47_v19, %v55_v20  ;;  %v216_v45 = vrot.slane %v211_v44, %v51_v18 }
  0x49   :  { %563 = vmatpush1.bf16.msra.mxu1 %v562_v24 }
  0x4a   :  { %565 = vmatprep.subr.bf16.mxu1 %v564_v25 }
  0x4d   :  { %567 = vmatpush1.bf16.msra.mxu1 %v566_v30 }
  0x4e   :  { %569 = vmatprep.subr.bf16.mxu1 %v568_v31 }
  0x51   :  { %571 = vmatpush1.bf16.msra.mxu1 %v570_v34 }
  0x52   :  { %573 = vmatprep.subr.bf16.mxu1 %v572_v37  ;;  %v602_v37 = vpack.c.bf16 %v317_v36, %v316_v35 }
  0x54   :  { %603 = vmatpush3.bf16.msra.mxu0 %v602_v37 }
  0x55   :  { %575 = vmatpush1.bf16.msra.mxu1 %v574_v40  ;;  %v604_v40 = vpack.c.bf16 %v335_v39, %v334_v38 }
  0x57   :  { %605 = vmatprep.subr.bf16.mxu0 %v604_v40 }
  0x58   :  { %607 = vmatpush3.bf16.msra.mxu0 %v606_v43 }
  0xed   :  { %v132_v23 = vpop.f32.mrb[0].mxu0 }
  0xee   :  { %v133_v24 = vadd.f32 %v132_v23, %v52_v21  ;;  %v134_v25 = vpop.f32.mrb[1].mxu0 }
  0xef   :  { %v135_v26 = vadd.f32 %v134_v25, %v56_v22 }
  0xf0   :  { %v143_v29 = vmax.f32 %v133_v24, 0.0 }
  0xf1   :  { %v138_v27 = vpop.f32.mrb[2].mxu0  ;;  %v144_v28 = vmax.f32 %v135_v26, 0.0 }
  0xf2   :  { %v139_v30 = vadd.f32 %v138_v27, %v52_v21  ;;  %v140_v31 = vpop.f32.mrb[3].mxu0 }
  0xf3   :  { %v141_v32 = vadd.f32 %v140_v31, %v56_v22  ;;  %287 = vmatprep.mubr.f32.mxu1 %v144_v28 }
  0xf4   :  { %288 = vmatmul.mubr.f32.vlgmr.msra.gmra.mrb[0].mxu1 %v143_v29  ;;  %v145_v34 = vmax.f32 %v139_v30, 0.0 }
  0xf5   :  { %v146_v33 = vmax.f32 %v141_v32, 0.0 }
  0xf7   :  { %293 = vmatprep.mubr.f32.mxu1 %v146_v33 }
  0xf8   :  { %294 = vmatmul.mubr.f32.gmra.mrb[2].mxu1 %v145_v34 }
 0x1c7   :  { %v289_v47 = vpop.f32.mrb[0].mxu1 }
 0x1c8   :  { %v290_v48 = vadd.f32 %v289_v47, %v216_v45  ;;  %v291_v49 = vpop.f32.mrb[1].mxu1 }
 0x1c9   :  { %v292_v50 = vadd.f32 %v291_v49, %v220_v46 }
 0x1ca   :  { %v300_v53 = vmax.f32 %v290_v48, 0.0 }
 0x1cb   :  { %v301_v51 = vmax.f32 %v292_v50, 0.0  ;;  %v295_v52 = vpop.f32.mrb[2].mxu1 }
 0x1cc   :  { %v296_v54 = vadd.f32 %v295_v52, %v216_v45  ;;  %v297_v55 = vpop.f32.mrb[3].mxu1 }
 0x1cd   :  { %v298_v56 = vadd.f32 %v297_v55, %v220_v46  ;;  %407 = vmatprep.mubr.f32.mxu0 %v301_v51 }
 0x1ce   :  { %408 = vmatmul.mubr.f32.vlgmr.msra.gmra.mrb[4].mxu0 %v300_v53  ;;  %v302_v58 = vmax.f32 %v296_v54, 0.0 }
 0x1cf   :  { %v303_v57 = vmax.f32 %v298_v56, 0.0 }
 0x1d1   :  { %412 = vmatprep.mubr.f32.mxu0 %v303_v57 }
 0x1d2   :  { %413 = vmatmul.mubr.f32.gmra.mrb[6].mxu0 %v302_v58 }
 0x2a1   :  { %v502_v59 = vpop.f32.mrb[4].mxu0 }
 0x2a2   :  { %v503_v61 = vpop.f32.mrb[5].mxu0 }
 0x2a3   :  { %v504_v62 = vadd.f32 %v503_v61, %v502_v59 }
 0x2a5   :  { %v410_v63 = vadd.f32 %v504_v62, %v467_v60  ;;  %v505_v0 = vpop.f32.mrb[6].mxu0 }
 0x2a6   :  { %v506_v1 = vpop.f32.mrb[7].mxu0 }
 0x2a7   :  { %v422_v2 = vmax.f32 %v410_v63, -5.0  ;;  %v507_v3 = vadd.f32 %v506_v1, %v505_v0  ;;  %v468_v4 = vclamps-f32 %v410_v63, 9.0 }
 0x2a9   :  { %v424_v5 = vmin.f32 %v422_v2, 2.0  ;;  %v415_v6 = vadd.f32 %v507_v3, %v467_v60  ;;  %615 = vtanh.f32 %v468_v4 }
 0x2ab   :  { %v426_v7 = vmul.f32 1.442695, %v424_v5  ;;  %v469_v8 = vclamps-f32 %v415_v6, 9.0  ;;  %v423_v9 = vmax.f32 %v415_v6, -5.0 }
 0x2ad   :  { %617 = vpow2.f32 %v426_v7  ;;  %v425_v10 = vmin.f32 %v423_v9, 2.0 }
 0x2ae   :  { %619 = vtanh.f32 %v469_v8 }
 0x2af   :  { %v428_v11 = vmul.f32 1.442695, %v425_v10 }
 0x2b1   :  { %621 = vpow2.f32 %v428_v11 }
 0x2b3   :  { %v616_v12 = vpop.eup %615 }
 0x2b4   :  { %434 = vrot.lane.b32.xlu0 %v616_v12, %s673_s12 }
 0x2b7   :  { %v618_v13 = vpop.eup %617 }
 0x2b8   :  { %v620_v14 = vpop.eup %619  ;;  %v441_v15 = vsel %vm440_vm1, %v468_v4, %v618_v13 }
 0x2b9   :  { %436 = vrot.lane.b32.xlu0 %v620_v14, %s673_s12 }
 0x2bb   :  { %v622_v16 = vpop.eup %621 }
 0x2bc   :  { %v442_v17 = vsel %vm440_vm1, %v469_v8, %v622_v16 }
 0x326   :  { %v435_v18 = vpop.permute.xlu0 %434 }
 0x327   :  { %v443_v19 = vsel %vm59_vm0, %v441_v15, %v435_v18 }
 0x328   :  { %446 = vst.msk [vmem:[#allocation5] sm:$0xff] %vm445_vm2, %v443_v19 }
 0x32b   :  { %v437_v20 = vpop.permute.xlu0 %436 }
 0x32c   :  { %v444_v21 = vsel %vm59_vm0, %v442_v17, %v437_v20 }
 0x32d   :  { %447 = vst.msk [vmem:[#allocation5 + $0x8] sm:$0xff] %vm445_vm2, %v444_v21 }
 0x32e   :  { %656 = shalt.err (!%p653_p12)
}
 0x32f   :  { %s657_s22 = scalar_lea.hbm %s879_s7, 256 }
 0x330   :  { %p658_p13 = scmp.ne.s32.totalorder %s879_s7, %s657_s22  ;;  %p661_p0 = scmp.lt.u32.totalorder %s657_s22, %s879_s7 }
 0x332   :  { %p663_p1 = pnand %p661_p0, %p658_p13 }
 0x334   :  { %666 = shalt.err (!%p663_p1)
}
 0x335   :  { %s676_s0 = smov 128   ;;  %s677_s25 = smov 8  }
 0x336   :  { %459 = dma.vmem_to_hbm [thread:$0]  %s454_s19, 256, %s879_s7, [#allocation4], %s676_s0, %s676_s0, %s677_s25  }
 0x337   :  { %669 = dma.done.wait [#allocation4], 256  }
 0x338   :  { %670 = vsyncadd [#allocation4], 4294967040 }
 0x339   :  { %463 = vsyncpa [#allocation3], 1 }
 0x33a   :  { %464 = vsyncpa [#allocation4], 1 }

</bundles_post_ra>
